<compile_context>
chip_gen: v7x
topology: tpu7x:2x2x1
jax: 0.10.0
libtpu: 0.0.40
codegen_flags: <defaults>
</compile_context>

<pallas_src>
import jax
import jax.numpy as jnp
from jax.experimental import pallas as pl
from jax.experimental.pallas import tpu as pltpu


# ------------------------------ fused kernel --------------------------------

def _cvae_kernel(img_ref, cls_ref, eps_ref,
                 e_w1_ref, e_b1_ref, e_w2_ref, e_b2_ref, e_w3_ref, e_b3_ref,
                 d_w1_ref, d_b1_ref, d_w2_ref, d_b2_ref, d_w3_ref, d_b3_ref,
                 lat_ref, img_out_ref):
    L = eps_ref.shape[1]          # latent dim
    H = e_w2_ref.shape[0]         # hidden width
    lat_w = lat_ref.shape[1]      # 128 (lane-dense latent slab)

    cls = cls_ref[...]            # (TB, 2H) f32: host-gathered [enc | dec] class rows
    enc_cls = cls[:, :H]
    dec_cls = cls[:, H:]

    # -------------------------------- encoder -------------------------------
    h1 = (jnp.dot(img_ref[...], e_w1_ref[...],
                  preferred_element_type=jnp.float32)
          + enc_cls + e_b1_ref[...])
    h1 = jnp.maximum(h1, 0.0)
    h2 = (jnp.dot(h1.astype(jnp.bfloat16), e_w2_ref[...],
                  preferred_element_type=jnp.float32) + e_b2_ref[...])
    h2 = jnp.maximum(h2, 0.0)
    # fused latent head: columns [0:L] = mean, [L:2L] = log-variance
    h3 = (jnp.dot(h2.astype(jnp.bfloat16), e_w3_ref[...],
                  preferred_element_type=jnp.float32) + e_b3_ref[...])
    mean = h3[:, :L]
    # TODO(synk): second head interpreted as log-variance (std = exp(0.5*h));
    # if the reference encoder emits log-std or softplus-std, change this line.
    std = jnp.exp(0.5 * h3[:, L:])

    # -------------------- reparameterization (host eps) ---------------------
    samples = eps_ref[...] * std + mean

    # lane-dense (TB, 128) latent slab: [mean | std | samples | zero-pad]
    pad = jnp.zeros((mean.shape[0], lat_w - 3 * L), jnp.float32)
    lat_ref[...] = jnp.concatenate([mean, std, samples, pad], axis=-1)

    # -------------------------------- decoder -------------------------------
    g1 = (jnp.dot(samples.astype(jnp.bfloat16), d_w1_ref[...],
                  preferred_element_type=jnp.float32)
          + dec_cls + d_b1_ref[...])
    g1 = jnp.maximum(g1, 0.0)
    g2 = (jnp.dot(g1.astype(jnp.bfloat16), d_w2_ref[...],
                  preferred_element_type=jnp.float32) + d_b2_ref[...])
    g2 = jnp.maximum(g2, 0.0)
    logits = (jnp.dot(g2.astype(jnp.bfloat16), d_w3_ref[...],
                      preferred_element_type=jnp.float32) + d_b3_ref[...])
    # sigmoid in f32, store bf16 -> halves HBM writeback of the dominant output
    img_out_ref[...] = jax.nn.sigmoid(logits).astype(img_out_ref.dtype)


# ------------------------------ host wrapper ---------------------------------

def mnist_conditional_vae_forward(image, z, eps, params, *, block_b=None):
    """image: (B, 1, slen, slen) float (NCHW); z: (B,) int labels;
    eps: (B, latent_dim) standard-normal noise for the reparameterization."""
    B = image.shape[0]
    slen, L, H, C = (params["slen"], params["latent_dim"],
                     params["hidden"], params["n_classes"])
    S2 = slen * slen
    assert 3 * L <= 128, "latent packing assumes 3*latent_dim <= 128 lanes"

    img_flat = image.reshape(B, S2).astype(jnp.bfloat16)     # halve input DMA bytes

    # class conditioning: clamp labels, then host-side row gather of the fused
    # [encoder | decoder] class table -> one lane-dense (B, 2H) VMEM input.
    z_i32 = jnp.clip(z.astype(jnp.int32), 0, C - 1)
    cls_table = jnp.concatenate([params["e_w1b"], params["d_w1b"]], axis=-1)  # (C, 2H)
    cls_rows = jnp.take(cls_table, z_i32, axis=0).astype(jnp.float32)         # (B, 2H)

    eps_f32 = eps.astype(jnp.float32)

    # Batch tiling: at large B pick block_b as a multiple of 256 on v6e/v7x
    # (128 on v5e); weights stay resident (constant index_map) and the batch
    # axis is "parallel" so v7x's two TensorCores split the grid.
    if block_b is None:
        block_b = B if B <= 512 else 512
    assert B % block_b == 0, "batch must be divisible by block_b"
    TB = block_b
    grid = (B // TB,)

    row = lambda shape: pl.BlockSpec(shape, lambda i: (i, 0))   # batch-tiled arrays
    rep = lambda shape: pl.BlockSpec(shape, lambda i: (0, 0))   # resident weights

    matmul_flops = 2 * B * (S2 * H + H * H + H * 2 * L + L * H + H * H + H * S2)
    w_bytes = (2 * (S2 * H + H * H + H * 2 * L + L * H + H * H + H * S2)    # bf16 W
               + 4 * (H + H + 2 * L + H + H + S2))                          # f32 b
    bytes_accessed = (B * S2 * 2 + B * 2 * H * 4 + B * L * 4   # inputs
                      + w_bytes                                # weights / biases
                      + B * 128 * 4 + B * S2 * 2)              # outputs

    lat_packed, img_mean_flat = pl.pallas_call(
        _cvae_kernel,
        out_shape=(jax.ShapeDtypeStruct((B, 128), jnp.float32),
                   jax.ShapeDtypeStruct((B, S2), jnp.bfloat16)),
        grid=grid,
        in_specs=[row((TB, S2)), row((TB, 2 * H)), row((TB, L)),
                  rep((S2, H)), rep((1, H)),
                  rep((H, H)), rep((1, H)),
                  rep((H, 2 * L)), rep((1, 2 * L)),
                  rep((L, H)), rep((1, H)),
                  rep((H, H)), rep((1, H)),
                  rep((H, S2)), rep((1, S2))],
        out_specs=(row((TB, 128)), row((TB, S2))),
        compiler_params=pltpu.CompilerParams(
            dimension_semantics=("parallel",)),
        cost_estimate=pl.CostEstimate(
            flops=matmul_flops,
            transcendentals=B * (L + S2),
            bytes_accessed=bytes_accessed),
    )(img_flat, cls_rows, eps_f32,
      params["e_w1a"], params["e_b1"], params["e_w2"], params["e_b2"],
      params["e_w3"], params["e_b3"],
      params["d_w1a"], params["d_b1"], params["d_w2"], params["d_b2"],
      params["d_w3"], params["d_b3"])

    latent_means = lat_packed[:, :L]
    latent_std = lat_packed[:, L:2 * L]
    latent_samples = lat_packed[:, 2 * L:3 * L]
    image_mean = img_mean_flat.astype(jnp.float32).reshape(B, 1, slen, slen)
    image_var = None                                          # matches the reference
    return latent_means, latent_std, latent_samples, image_mean, image_var


# ------------------------------- param init ----------------------------------

def init_params(key, slen=16, n_classes=10, latent_dim=8, hidden=128):
    S2 = slen * slen
    ks = jax.random.split(key, 8)

    def w(k, shape, dtype=jnp.bfloat16, scale=0.05):
        return (scale * jax.random.normal(k, shape)).astype(dtype)

    return {
        "slen": slen, "n_classes": n_classes,
        "latent_dim": latent_dim, "hidden": hidden,
        # encoder: Linear(S2 + C -> H), Linear(H -> H), Linear(H -> 2L)
        "e_w1a": w(ks[0], (S2, hidden)),                       # image part of W1
        "e_w1b": w(ks[1], (n_classes, hidden), jnp.float32),   # one-hot part (host gather)
        "e_b1": jnp.zeros((1, hidden), jnp.float32),
        "e_w2": w(ks[2], (hidden, hidden)),
        "e_b2": jnp.zeros((1, hidden), jnp.float32),
        "e_w3": w(ks[3], (hidden, 2 * latent_dim)),            # fused [mean | logvar] head
        "e_b3": jnp.zeros((1, 2 * latent_dim), jnp.float32),
        # decoder: Linear(L + C -> H), Linear(H -> H), Linear(H -> S2)
        "d_w1a": w(ks[4], (latent_dim, hidden)),
        "d_w1b": w(ks[5], (n_classes, hidden), jnp.float32),
        "d_b1": jnp.zeros((1, hidden), jnp.float32),
        "d_w2": w(ks[6], (hidden, hidden)),
        "d_b2": jnp.zeros((1, hidden), jnp.float32),
        "d_w3": w(ks[7], (hidden, S2)),
        "d_b3": jnp.zeros((1, S2), jnp.float32),
    }


# ---------------------------------- main --------------------------------------

if __name__ == "__main__":
    B, slen, n_classes, latent_dim, hidden = 8, 16, 10, 8, 128

    key = jax.random.PRNGKey(0)
    k_img, k_z, k_eps, k_params = jax.random.split(key, 4)

    image = jax.random.uniform(k_img, (B, 1, slen, slen), dtype=jnp.float32)
    z = jax.random.randint(k_z, (B,), 0, n_classes)
    eps = jax.random.normal(k_eps, (B, latent_dim), dtype=jnp.float32)

    params = init_params(k_params, slen=slen, n_classes=n_classes,
                         latent_dim=latent_dim, hidden=hidden)

    latent_means, latent_std, latent_samples, image_mean, image_var = (
        mnist_conditional_vae_forward(image, z, eps, params))

    jax.block_until_ready((latent_means, latent_std, latent_samples, image_mean))

    assert latent_means.shape == (B, latent_dim)
    assert latent_std.shape == (B, latent_dim)
    assert latent_samples.shape == (B, latent_dim)
    assert image_mean.shape == (B, 1, slen, slen)
    assert image_var is None
    assert bool(jnp.all(jnp.isfinite(image_mean)))
    assert bool(jnp.all(latent_std > 0))
    print("KERNEL_OK")
</pallas_src>

<mosaic_0001>
module attributes {stable_mosaic.version = 11 : i64} {
  func.func @_cvae_kernel(%arg0: i32, %arg1: memref<8x256xbf16, #tpu.memory_space<vmem>>, %arg2: memref<8x256xf32, #tpu.memory_space<vmem>>, %arg3: memref<8x8xf32, #tpu.memory_space<vmem>>, %arg4: memref<256x128xbf16, #tpu.memory_space<vmem>>, %arg5: memref<1x128xf32, #tpu.memory_space<vmem>>, %arg6: memref<128x128xbf16, #tpu.memory_space<vmem>>, %arg7: memref<1x128xf32, #tpu.memory_space<vmem>>, %arg8: memref<128x16xbf16, #tpu.memory_space<vmem>>, %arg9: memref<1x16xf32, #tpu.memory_space<vmem>>, %arg10: memref<8x128xbf16, #tpu.memory_space<vmem>>, %arg11: memref<1x128xf32, #tpu.memory_space<vmem>>, %arg12: memref<128x128xbf16, #tpu.memory_space<vmem>>, %arg13: memref<1x128xf32, #tpu.memory_space<vmem>>, %arg14: memref<128x256xbf16, #tpu.memory_space<vmem>>, %arg15: memref<1x256xf32, #tpu.memory_space<vmem>>, %arg16: memref<8x128xf32, #tpu.memory_space<vmem>>, %arg17: memref<8x256xbf16, #tpu.memory_space<vmem>>) attributes {dimension_semantics = [#tpu.dimension_semantics<parallel>], iteration_bounds = array<i64: 1>, scalar_prefetch = 0 : i64, scratch_operands = 0 : i64, tpu.core_type = #tpu.core_type<tc>, window_params = [{transform_indices = @transform_0, window_bounds = array<i64: 8, 256>}, {transform_indices = @transform_1, window_bounds = array<i64: 8, 256>}, {transform_indices = @transform_2, window_bounds = array<i64: 8, 8>}, {pipeline_mode = #tpu.pipeline_mode<synchronous>, transform_indices = @transform_3, window_bounds = array<i64: 256, 128>}, {pipeline_mode = #tpu.pipeline_mode<synchronous>, transform_indices = @transform_4, window_bounds = array<i64: 1, 128>}, {pipeline_mode = #tpu.pipeline_mode<synchronous>, transform_indices = @transform_5, window_bounds = array<i64: 128, 128>}, {pipeline_mode = #tpu.pipeline_mode<synchronous>, transform_indices = @transform_6, window_bounds = array<i64: 1, 128>}, {pipeline_mode = #tpu.pipeline_mode<synchronous>, transform_indices = @transform_7, window_bounds = array<i64: 128, 16>}, {pipeline_mode = #tpu.pipeline_mode<synchronous>, transform_indices = @transform_8, window_bounds = array<i64: 1, 16>}, {pipeline_mode = #tpu.pipeline_mode<synchronous>, transform_indices = @transform_9, window_bounds = array<i64: 8, 128>}, {pipeline_mode = #tpu.pipeline_mode<synchronous>, transform_indices = @transform_10, window_bounds = array<i64: 1, 128>}, {pipeline_mode = #tpu.pipeline_mode<synchronous>, transform_indices = @transform_11, window_bounds = array<i64: 128, 128>}, {pipeline_mode = #tpu.pipeline_mode<synchronous>, transform_indices = @transform_12, window_bounds = array<i64: 1, 128>}, {pipeline_mode = #tpu.pipeline_mode<synchronous>, transform_indices = @transform_13, window_bounds = array<i64: 128, 256>}, {pipeline_mode = #tpu.pipeline_mode<synchronous>, transform_indices = @transform_14, window_bounds = array<i64: 1, 256>}, {transform_indices = @transform_15, window_bounds = array<i64: 8, 128>}, {transform_indices = @transform_16, window_bounds = array<i64: 8, 256>}]} {
    %c0 = arith.constant 0 : index
    %c0_0 = arith.constant 0 : index
    %0 = vector.load %arg2[%c0, %c0_0] : memref<8x256xf32, #tpu.memory_space<vmem>>, vector<8x256xf32>
    %1 = vector.extract_strided_slice %0 {offsets = [0, 0], sizes = [8, 128], strides = [1, 1]} : vector<8x256xf32> to vector<8x128xf32>
    %2 = vector.extract_strided_slice %0 {offsets = [0, 128], sizes = [8, 128], strides = [1, 1]} : vector<8x256xf32> to vector<8x128xf32>
    %c0_1 = arith.constant 0 : index
    %c0_2 = arith.constant 0 : index
    %3 = vector.load %arg1[%c0_1, %c0_2] : memref<8x256xbf16, #tpu.memory_space<vmem>>, vector<8x256xbf16>
    %c0_3 = arith.constant 0 : index
    %c0_4 = arith.constant 0 : index
    %4 = vector.load %arg4[%c0_3, %c0_4] : memref<256x128xbf16, #tpu.memory_space<vmem>>, vector<256x128xbf16>
    %cst = arith.constant dense<0.000000e+00> : vector<8x128xf32>
    %5 = tpu.matmul %3, %4, %cst {dimension_numbers = #tpu.dot_dimension_numbers<[1], [0], [0], [1], [0, 0, 1, 1], [], []>} : vector<8x256xbf16>, vector<256x128xbf16>, vector<8x128xf32> -> vector<8x128xf32>
    %6 = arith.addf %5, %1 : vector<8x128xf32>
    %c0_5 = arith.constant 0 : index
    %c0_6 = arith.constant 0 : index
    %7 = vector.load %arg5[%c0_5, %c0_6] : memref<1x128xf32, #tpu.memory_space<vmem>>, vector<1x128xf32>
    %8 = vector.broadcast %7 : vector<1x128xf32> to vector<8x128xf32>
    %9 = arith.addf %6, %8 : vector<8x128xf32>
    %cst_7 = arith.constant 0.000000e+00 : f32
    %10 = vector.broadcast %cst_7 : f32 to vector<8x128xf32>
    %11 = arith.maximumf %9, %10 : vector<8x128xf32>
    %12 = arith.truncf %11 : vector<8x128xf32> to vector<8x128xbf16>
    %c0_8 = arith.constant 0 : index
    %c0_9 = arith.constant 0 : index
    %13 = vector.load %arg6[%c0_8, %c0_9] : memref<128x128xbf16, #tpu.memory_space<vmem>>, vector<128x128xbf16>
    %cst_10 = arith.constant dense<0.000000e+00> : vector<8x128xf32>
    %14 = tpu.matmul %12, %13, %cst_10 {dimension_numbers = #tpu.dot_dimension_numbers<[1], [0], [0], [1], [0, 0, 1, 1], [], []>} : vector<8x128xbf16>, vector<128x128xbf16>, vector<8x128xf32> -> vector<8x128xf32>
    %c0_11 = arith.constant 0 : index
    %c0_12 = arith.constant 0 : index
    %15 = vector.load %arg7[%c0_11, %c0_12] : memref<1x128xf32, #tpu.memory_space<vmem>>, vector<1x128xf32>
    %16 = vector.broadcast %15 : vector<1x128xf32> to vector<8x128xf32>
    %17 = arith.addf %14, %16 : vector<8x128xf32>
    %cst_13 = arith.constant 0.000000e+00 : f32
    %18 = vector.broadcast %cst_13 : f32 to vector<8x128xf32>
    %19 = arith.maximumf %17, %18 : vector<8x128xf32>
    %20 = arith.truncf %19 : vector<8x128xf32> to vector<8x128xbf16>
    %c0_14 = arith.constant 0 : index
    %c0_15 = arith.constant 0 : index
    %21 = vector.load %arg8[%c0_14, %c0_15] : memref<128x16xbf16, #tpu.memory_space<vmem>>, vector<128x16xbf16>
    %cst_16 = arith.constant dense<0.000000e+00> : vector<8x16xf32>
    %22 = tpu.matmul %20, %21, %cst_16 {dimension_numbers = #tpu.dot_dimension_numbers<[1], [0], [0], [1], [0, 0, 1, 1], [], []>} : vector<8x128xbf16>, vector<128x16xbf16>, vector<8x16xf32> -> vector<8x16xf32>
    %c0_17 = arith.constant 0 : index
    %c0_18 = arith.constant 0 : index
    %23 = vector.load %arg9[%c0_17, %c0_18] : memref<1x16xf32, #tpu.memory_space<vmem>>, vector<1x16xf32>
    %24 = vector.broadcast %23 : vector<1x16xf32> to vector<8x16xf32>
    %25 = arith.addf %22, %24 : vector<8x16xf32>
    %26 = vector.extract_strided_slice %25 {offsets = [0, 0], sizes = [8, 8], strides = [1, 1]} : vector<8x16xf32> to vector<8x8xf32>
    %27 = vector.extract_strided_slice %25 {offsets = [0, 8], sizes = [8, 8], strides = [1, 1]} : vector<8x16xf32> to vector<8x8xf32>
    %cst_19 = arith.constant 5.000000e-01 : f32
    %28 = vector.broadcast %cst_19 : f32 to vector<8x8xf32>
    %29 = arith.mulf %28, %27 : vector<8x8xf32>
    %30 = math.exp %29 : vector<8x8xf32>
    %c0_20 = arith.constant 0 : index
    %c0_21 = arith.constant 0 : index
    %31 = vector.load %arg3[%c0_20, %c0_21] : memref<8x8xf32, #tpu.memory_space<vmem>>, vector<8x8xf32>
    %32 = arith.mulf %31, %30 : vector<8x8xf32>
    %33 = arith.addf %32, %26 : vector<8x8xf32>
    %cst_22 = arith.constant 0.000000e+00 : f32
    %34 = vector.broadcast %cst_22 : f32 to vector<8x104xf32>
    %35 = tpu.concatenate %26, %30, %33, %34 in 1 : vector<8x8xf32>, vector<8x8xf32>, vector<8x8xf32>, vector<8x104xf32> -> vector<8x128xf32>
    %c0_23 = arith.constant 0 : index
    %c0_24 = arith.constant 0 : index
    %36 = vector.load %arg16[%c0_23, %c0_24] : memref<8x128xf32, #tpu.memory_space<vmem>>, vector<8x128xf32>
    tpu.vector_store %arg16[%c0_23, %c0_24], %35 {strides = array<i32>} : memref<8x128xf32, #tpu.memory_space<vmem>>, vector<8x128xf32>,
    %37 = arith.truncf %33 : vector<8x8xf32> to vector<8x8xbf16>
    %c0_25 = arith.constant 0 : index
    %c0_26 = arith.constant 0 : index
    %38 = vector.load %arg10[%c0_25, %c0_26] : memref<8x128xbf16, #tpu.memory_space<vmem>>, vector<8x128xbf16>
    %cst_27 = arith.constant dense<0.000000e+00> : vector<8x128xf32>
    %39 = tpu.matmul %37, %38, %cst_27 {dimension_numbers = #tpu.dot_dimension_numbers<[1], [0], [0], [1], [0, 0, 1, 1], [], []>} : vector<8x8xbf16>, vector<8x128xbf16>, vector<8x128xf32> -> vector<8x128xf32>
    %40 = arith.addf %39, %2 : vector<8x128xf32>
    %c0_28 = arith.constant 0 : index
    %c0_29 = arith.constant 0 : index
    %41 = vector.load %arg11[%c0_28, %c0_29] : memref<1x128xf32, #tpu.memory_space<vmem>>, vector<1x128xf32>
    %42 = vector.broadcast %41 : vector<1x128xf32> to vector<8x128xf32>
    %43 = arith.addf %40, %42 : vector<8x128xf32>
    %cst_30 = arith.constant 0.000000e+00 : f32
    %44 = vector.broadcast %cst_30 : f32 to vector<8x128xf32>
    %45 = arith.maximumf %43, %44 : vector<8x128xf32>
    %46 = arith.truncf %45 : vector<8x128xf32> to vector<8x128xbf16>
    %c0_31 = arith.constant 0 : index
    %c0_32 = arith.constant 0 : index
    %47 = vector.load %arg12[%c0_31, %c0_32] : memref<128x128xbf16, #tpu.memory_space<vmem>>, vector<128x128xbf16>
    %cst_33 = arith.constant dense<0.000000e+00> : vector<8x128xf32>
    %48 = tpu.matmul %46, %47, %cst_33 {dimension_numbers = #tpu.dot_dimension_numbers<[1], [0], [0], [1], [0, 0, 1, 1], [], []>} : vector<8x128xbf16>, vector<128x128xbf16>, vector<8x128xf32> -> vector<8x128xf32>
    %c0_34 = arith.constant 0 : index
    %c0_35 = arith.constant 0 : index
    %49 = vector.load %arg13[%c0_34, %c0_35] : memref<1x128xf32, #tpu.memory_space<vmem>>, vector<1x128xf32>
    %50 = vector.broadcast %49 : vector<1x128xf32> to vector<8x128xf32>
    %51 = arith.addf %48, %50 : vector<8x128xf32>
    %cst_36 = arith.constant 0.000000e+00 : f32
    %52 = vector.broadcast %cst_36 : f32 to vector<8x128xf32>
    %53 = arith.maximumf %51, %52 : vector<8x128xf32>
    %54 = arith.truncf %53 : vector<8x128xf32> to vector<8x128xbf16>
    %c0_37 = arith.constant 0 : index
    %c0_38 = arith.constant 0 : index
    %55 = vector.load %arg14[%c0_37, %c0_38] : memref<128x256xbf16, #tpu.memory_space<vmem>>, vector<128x256xbf16>
    %cst_39 = arith.constant dense<0.000000e+00> : vector<8x256xf32>
    %56 = tpu.matmul %54, %55, %cst_39 {dimension_numbers = #tpu.dot_dimension_numbers<[1], [0], [0], [1], [0, 0, 1, 1], [], []>} : vector<8x128xbf16>, vector<128x256xbf16>, vector<8x256xf32> -> vector<8x256xf32>
    %c0_40 = arith.constant 0 : index
    %c0_41 = arith.constant 0 : index
    %57 = vector.load %arg15[%c0_40, %c0_41] : memref<1x256xf32, #tpu.memory_space<vmem>>, vector<1x256xf32>
    %58 = vector.broadcast %57 : vector<1x256xf32> to vector<8x256xf32>
    %59 = arith.addf %56, %58 : vector<8x256xf32>
    %60 = arith.negf %59 : vector<8x256xf32>
    %61 = math.exp %60 : vector<8x256xf32>
    %cst_42 = arith.constant 1.000000e+00 : f32
    %62 = vector.broadcast %cst_42 : f32 to vector<8x256xf32>
    %63 = arith.addf %62, %61 : vector<8x256xf32>
    %64 = arith.divf %62, %63 : vector<8x256xf32>
    %65 = arith.truncf %64 : vector<8x256xf32> to vector<8x256xbf16>
    %c0_43 = arith.constant 0 : index
    %c0_44 = arith.constant 0 : index
    %66 = vector.load %arg17[%c0_43, %c0_44] : memref<8x256xbf16, #tpu.memory_space<vmem>>, vector<8x256xbf16>
    tpu.vector_store %arg17[%c0_43, %c0_44], %65 {strides = array<i32>} : memref<8x256xbf16, #tpu.memory_space<vmem>>, vector<8x256xbf16>,
    return
  }
  func.func @transform_0(%arg0: i32) -> (i32, i32) {
    %c0_i32 = arith.constant 0 : i32
    %c0_i32_0 = arith.constant 0 : i32
    return %arg0, %c0_i32 : i32, i32
  }
  func.func @transform_1(%arg0: i32) -> (i32, i32) {
    %c0_i32 = arith.constant 0 : i32
    %c0_i32_0 = arith.constant 0 : i32
    return %arg0, %c0_i32 : i32, i32
  }
  func.func @transform_2(%arg0: i32) -> (i32, i32) {
    %c0_i32 = arith.constant 0 : i32
    %c0_i32_0 = arith.constant 0 : i32
    return %arg0, %c0_i32 : i32, i32
  }
  func.func @transform_3(%arg0: i32) -> (i32, i32) {
    %c0_i32 = arith.constant 0 : i32
    %c0_i32_0 = arith.constant 0 : i32
    %c0_i32_1 = arith.constant 0 : i32
    return %c0_i32, %c0_i32_0 : i32, i32
  }
  func.func @transform_4(%arg0: i32) -> (i32, i32) {
    %c0_i32 = arith.constant 0 : i32
    %c0_i32_0 = arith.constant 0 : i32
    %c0_i32_1 = arith.constant 0 : i32
    return %c0_i32, %c0_i32_0 : i32, i32
  }
  func.func @transform_5(%arg0: i32) -> (i32, i32) {
    %c0_i32 = arith.constant 0 : i32
    %c0_i32_0 = arith.constant 0 : i32
    %c0_i32_1 = arith.constant 0 : i32
    return %c0_i32, %c0_i32_0 : i32, i32
  }
  func.func @transform_6(%arg0: i32) -> (i32, i32) {
    %c0_i32 = arith.constant 0 : i32
    %c0_i32_0 = arith.constant 0 : i32
    %c0_i32_1 = arith.constant 0 : i32
    return %c0_i32, %c0_i32_0 : i32, i32
  }
  func.func @transform_7(%arg0: i32) -> (i32, i32) {
    %c0_i32 = arith.constant 0 : i32
    %c0_i32_0 = arith.constant 0 : i32
    %c0_i32_1 = arith.constant 0 : i32
    return %c0_i32, %c0_i32_0 : i32, i32
  }
  func.func @transform_8(%arg0: i32) -> (i32, i32) {
    %c0_i32 = arith.constant 0 : i32
    %c0_i32_0 = arith.constant 0 : i32
    %c0_i32_1 = arith.constant 0 : i32
    return %c0_i32, %c0_i32_0 : i32, i32
  }
  func.func @transform_9(%arg0: i32) -> (i32, i32) {
    %c0_i32 = arith.constant 0 : i32
    %c0_i32_0 = arith.constant 0 : i32
    %c0_i32_1 = arith.constant 0 : i32
    return %c0_i32, %c0_i32_0 : i32, i32
  }
  func.func @transform_10(%arg0: i32) -> (i32, i32) {
    %c0_i32 = arith.constant 0 : i32
    %c0_i32_0 = arith.constant 0 : i32
    %c0_i32_1 = arith.constant 0 : i32
    return %c0_i32, %c0_i32_0 : i32, i32
  }
  func.func @transform_11(%arg0: i32) -> (i32, i32) {
    %c0_i32 = arith.constant 0 : i32
    %c0_i32_0 = arith.constant 0 : i32
    %c0_i32_1 = arith.constant 0 : i32
    return %c0_i32, %c0_i32_0 : i32, i32
  }
  func.func @transform_12(%arg0: i32) -> (i32, i32) {
    %c0_i32 = arith.constant 0 : i32
    %c0_i32_0 = arith.constant 0 : i32
    %c0_i32_1 = arith.constant 0 : i32
    return %c0_i32, %c0_i32_0 : i32, i32
  }
  func.func @transform_13(%arg0: i32) -> (i32, i32) {
    %c0_i32 = arith.constant 0 : i32
    %c0_i32_0 = arith.constant 0 : i32
    %c0_i32_1 = arith.constant 0 : i32
    return %c0_i32, %c0_i32_0 : i32, i32
  }
  func.func @transform_14(%arg0: i32) -> (i32, i32) {
    %c0_i32 = arith.constant 0 : i32
    %c0_i32_0 = arith.constant 0 : i32
    %c0_i32_1 = arith.constant 0 : i32
    return %c0_i32, %c0_i32_0 : i32, i32
  }
  func.func @transform_15(%arg0: i32) -> (i32, i32) {
    %c0_i32 = arith.constant 0 : i32
    %c0_i32_0 = arith.constant 0 : i32
    return %arg0, %c0_i32 : i32, i32
  }
  func.func @transform_16(%arg0: i32) -> (i32, i32) {
    %c0_i32 = arith.constant 0 : i32
    %c0_i32_0 = arith.constant 0 : i32
    return %arg0, %c0_i32 : i32, i32
  }
}

</mosaic_0001>

<bundles_post_ra>
// kernel: tpu_custom_call.1
= control target key start
LH: loop header
LB: loop body
LE: loop exit
PB: predicated region body
PF: predicated region fallthrough
CT: control target
= control target key end

     0   :  { %s1764_s0 = inlined_call_operand.vmem [shape: bf16[8,256], index: 0, kind: input, shape index: {}]   ;;  %s1765_s1 = inlined_call_operand.vmem [shape: f32[8,256], index: 1, kind: input, shape index: {}]   ;;  %s1766_s2 = inlined_call_operand.hbm [shape: f32[8,8], index: 2, kind: input, shape index: {}]   ;;  %s1767_s3 = inlined_call_operand.hbm [shape: bf16[256,128], index: 3, kind: input, shape index: {}]   ;;  %s1768_s4 = inlined_call_operand.hbm [shape: f32[1,128], index: 4, kind: input, shape index: {}]   ;;  %s1769_s5 = inlined_call_operand.vmem [shape: bf16[128,128], index: 5, kind: input, shape index: {}]   ;;  %s1770_s6 = inlined_call_operand.hbm [shape: f32[1,128], index: 6, kind: input, shape index: {}]   ;;  %s1771_s7 = inlined_call_operand.vmem [shape: bf16[128,16], index: 7, kind: input, shape index: {}]   ;;  %s1772_s8 = inlined_call_operand.hbm [shape: f32[1,16], index: 8, kind: input, shape index: {}]   ;;  %s1773_s9 = inlined_call_operand.vmem [shape: bf16[8,128], index: 9, kind: input, shape index: {}]   ;;  %s1774_s10 = inlined_call_operand.vmem [shape: f32[1,128], index: 10, kind: input, shape index: {}]   ;;  %s1775_s11 = inlined_call_operand.hbm [shape: bf16[128,128], index: 11, kind: input, shape index: {}]   ;;  %s1776_s12 = inlined_call_operand.vmem [shape: f32[1,128], index: 12, kind: input, shape index: {}]   ;;  %s1777_s13 = inlined_call_operand.hbm [shape: bf16[128,256], index: 13, kind: input, shape index: {}]   ;;  %s1778_s14 = inlined_call_operand.vmem [shape: f32[1,256], index: 14, kind: input, shape index: {}]   ;;  %s1779_s15 = inlined_call_operand.hbm [shape: f32[8,128], index: 15, kind: output, shape index: {0}]   ;;  %s1780_s16 = inlined_call_operand.hbm [shape: bf16[8,256], index: 16, kind: output, shape index: {1}]  }
   0x1   :  { %1782 = sst [smem:[#allocation23_spill]] %s1764_s0 }
   0x2   :  { %1783 = sst [smem:[#allocation24_spill]] %s1780_s16 }
   0x3   :  { %22 = vsyncpa [#allocation3], 0 }
   0x4   :  { %23 = vsyncpa [#allocation6], 0 }
   0x5   :  { %24 = vsyncpa [#allocation9], 0 }
   0x6   :  { %25 = vsyncpa [#allocation12], 0 }
   0x7   :  { %26 = vsyncpa [#allocation4], 0 }
   0x8   :  { %27 = vsyncpa [#allocation16], 0  ;;  %s1438_s21 = smov [#allocation5]   ;;  %s1228_s25 = scalar_lea.hbm %s1767_s3, 2048 }
   0x9   :  { %s47_s22 = sshll.u32 %s1438_s21, 4  ;;  %p1229_p0 = scmp.ne.s32.totalorder %s1767_s3, %s1228_s25  ;;  %s48_s22 = int_to_ptr.vmem [resolvable:$true] %s47_s22 }
   0xa   :  { %p1232_p1 = scmp.lt.u32.totalorder %s1228_s25, %s1767_s3 }
   0xc   :  { %p1234_p2 = pnand %p1232_p1, %p1229_p0 }
   0xe   :  { %1237 = shalt.err (!%p1234_p2)
}
   0xf   :  { %s1238_s30 = scalar_lea.vmem %s48_s22, 2048  ;;  %p1243_p4 = scmp.lt.s32.totalorder %s48_s22, %s48_s22 }
  0x10   :  { %p1239_p3 = scmp.ne.s32.totalorder %s48_s22, %s1238_s30  ;;  %p1244_p5 = scmp.lt.s32.totalorder %s1238_s30, %s1238_s30 }
  0x12   :  { %p1245_p6 = por %p1244_p5, %p1243_p4 }
  0x14   :  { %p1246_p7 = pnand %p1245_p6, %p1239_p3 }
  0x16   :  { %1249 = shalt.err (!%p1246_p7)
}
  0x17   :  { %s1439_s0 = smov 64   ;;  %s1440_s17 = smov 4  }
  0x18   :  { %53 = dma.hbm_to_vmem [thread:$0]  %s1767_s3, 2048, %s48_s22, [#allocation6], %s1439_s0, %s1439_s0, %s1440_s17  }
  0x19   :  { %s1441_s20 = smov [#allocation8]   ;;  %s1442_s23 = smov [#allocation11]  }
  0x1a   :  { %s72_s21 = sshll.u32 %s1441_s20, 4  ;;  %s97_s24 = sshll.u32 %s1442_s23, 4  ;;  %s73_s21 = int_to_ptr.vmem [resolvable:$true] %s72_s21  ;;  %s98_s24 = int_to_ptr.vmem [resolvable:$true] %s97_s24 }
  0x1b   :  { %s1250_s27 = scalar_lea.hbm %s1770_s6, 16 }
  0x1c   :  { %p1251_p8 = scmp.ne.s32.totalorder %s1770_s6, %s1250_s27  ;;  %p1254_p9 = scmp.lt.u32.totalorder %s1250_s27, %s1770_s6 }
  0x1e   :  { %p1256_p10 = pnand %p1254_p9, %p1251_p8 }
  0x20   :  { %1259 = shalt.err (!%p1256_p10)
}
  0x21   :  { %s1260_s3 = scalar_lea.vmem %s73_s21, 16  ;;  %s1264_s22 = scalar_lea.vmem %s73_s21, 32 }
  0x22   :  { %p1261_p11 = scmp.ne.s32.totalorder %s73_s21, %s1260_s3  ;;  %p1265_p12 = scmp.lt.s32.totalorder %s73_s21, %s73_s21 }
  0x23   :  { %p1266_p13 = scmp.lt.s32.totalorder %s1264_s22, %s1260_s3 }
  0x25   :  { %p1267_p0 = por %p1266_p13, %p1265_p12 }
  0x27   :  { %p1268_p1 = pnand %p1267_p0, %p1261_p11 }
  0x29   :  { %1271 = shalt.err (!%p1268_p1)
}
  0x2a   :  { %75 = dma.hbm_to_vmem [thread:$0]  %s1770_s6, 16, %s73_s21, [#allocation9]  }
  0x2b   :  { %s1272_s16 = scalar_lea.hbm %s1775_s11, 1024 }
  0x2c   :  { %p1273_p2 = scmp.ne.s32.totalorder %s1775_s11, %s1272_s16  ;;  %p1276_p3 = scmp.lt.u32.totalorder %s1272_s16, %s1775_s11 }
  0x2e   :  { %p1278_p4 = pnand %p1276_p3, %p1273_p2 }
  0x30   :  { %1281 = shalt.err (!%p1278_p4)
}
  0x31   :  { %s1282_s29 = scalar_lea.vmem %s98_s24, 1024  ;;  %p1287_p6 = scmp.lt.s32.totalorder %s98_s24, %s98_s24 }
  0x32   :  { %p1283_p5 = scmp.ne.s32.totalorder %s98_s24, %s1282_s29  ;;  %p1288_p7 = scmp.lt.s32.totalorder %s1282_s29, %s1282_s29 }
  0x34   :  { %p1289_p8 = por %p1288_p7, %p1287_p6 }
  0x36   :  { %p1290_p9 = pnand %p1289_p8, %p1283_p5 }
  0x38   :  { %1293 = shalt.err (!%p1290_p9)
}
  0x39   :  { %103 = dma.hbm_to_vmem [thread:$0]  %s1775_s11, 1024, %s98_s24, [#allocation12], %s1439_s0, %s1439_s0, %s1440_s17  }
  0x3a   :  { %s1443_s30 = smov [#allocation2]   ;;  %s1444_s22 = smov [#allocation7]  }
  0x3b   :  { %s38_s3 = sshll.u32 %s1443_s30, 4  ;;  %s60_s18 = sshll.u32 %s1444_s22, 4  ;;  %s39_s3 = int_to_ptr.vmem [resolvable:$true] %s38_s3  ;;  %s61_s18 = int_to_ptr.vmem [resolvable:$true] %s60_s18 }
  0x3c   :  { %s1294_s23 = scalar_lea.hbm %s1766_s2, 128 }
  0x3d   :  { %p1295_p10 = scmp.ne.s32.totalorder %s1766_s2, %s1294_s23  ;;  %p1298_p11 = scmp.lt.u32.totalorder %s1294_s23, %s1766_s2 }
  0x3f   :  { %p1300_p12 = pnand %p1298_p11, %p1295_p10 }
  0x41   :  { %1303 = shalt.err (!%p1300_p12)
}
  0x42   :  { %s1304_s11 = scalar_lea.vmem %s39_s3, 128  ;;  %p1309_p0 = scmp.lt.s32.totalorder %s39_s3, %s39_s3 }
  0x43   :  { %p1305_p13 = scmp.ne.s32.totalorder %s39_s3, %s1304_s11  ;;  %p1310_p1 = scmp.lt.s32.totalorder %s1304_s11, %s1304_s11 }
  0x45   :  { %p1311_p2 = por %p1310_p1, %p1309_p0 }
  0x47   :  { %p1312_p3 = pnand %p1311_p2, %p1305_p13 }
  0x49   :  { %1315 = shalt.err (!%p1312_p3)
}
  0x4a   :  { %41 = dma.hbm_to_vmem [thread:$0]  %s1766_s2, 128, %s39_s3, [#allocation3]  }
  0x4b   :  { %s1316_s29 = scalar_lea.hbm %s1768_s4, 16 }
  0x4c   :  { %p1317_p4 = scmp.ne.s32.totalorder %s1768_s4, %s1316_s29  ;;  %p1320_p5 = scmp.lt.u32.totalorder %s1316_s29, %s1768_s4 }
  0x4e   :  { %p1322_p6 = pnand %p1320_p5, %p1317_p4 }
  0x50   :  { %1325 = shalt.err (!%p1322_p6)
}
  0x51   :  { %s1326_s19 = scalar_lea.vmem %s61_s18, 16  ;;  %s1330_s20 = scalar_lea.vmem %s61_s18, 32 }
  0x52   :  { %p1327_p7 = scmp.ne.s32.totalorder %s61_s18, %s1326_s19  ;;  %p1331_p8 = scmp.lt.s32.totalorder %s61_s18, %s61_s18 }
  0x53   :  { %p1332_p9 = scmp.lt.s32.totalorder %s1330_s20, %s1326_s19 }
  0x55   :  { %p1333_p10 = por %p1332_p9, %p1331_p8 }
  0x57   :  { %p1334_p11 = pnand %p1333_p10, %p1327_p7 }
  0x59   :  { %1337 = shalt.err (!%p1334_p11)
}
  0x5a   :  { %63 = dma.hbm_to_vmem [thread:$0]  %s1768_s4, 16, %s61_s18, [#allocation6]  }
  0x5b   :  { %s1445_s23 = smov [#allocation10]   ;;  %s1446_s25 = smov [#allocation13]  }
  0x5c   :  { %s84_s16 = sshll.u32 %s1445_s23, 4  ;;  %s111_s26 = sshll.u32 %s1446_s25, 4  ;;  %s85_s16 = int_to_ptr.vmem [resolvable:$true] %s84_s16  ;;  %s112_s26 = int_to_ptr.vmem [resolvable:$true] %s111_s26 }
  0x5d   :  { %s1338_s0 = scalar_lea.hbm %s1772_s8, 16 }
  0x5e   :  { %p1339_p12 = scmp.ne.s32.totalorder %s1772_s8, %s1338_s0  ;;  %p1342_p13 = scmp.lt.u32.totalorder %s1338_s0, %s1772_s8 }
  0x60   :  { %p1344_p0 = pnand %p1342_p13, %p1339_p12 }
  0x62   :  { %1347 = shalt.err (!%p1344_p0)
}
  0x63   :  { %s1348_s4 = scalar_lea.vmem %s85_s16, 16  ;;  %s1352_s18 = scalar_lea.vmem %s85_s16, 32 }
  0x64   :  { %p1349_p1 = scmp.ne.s32.totalorder %s85_s16, %s1348_s4  ;;  %p1353_p2 = scmp.lt.s32.totalorder %s85_s16, %s85_s16 }
  0x65   :  { %p1354_p3 = scmp.lt.s32.totalorder %s1352_s18, %s1348_s4 }
  0x67   :  { %p1355_p4 = por %p1354_p3, %p1353_p2 }
  0x69   :  { %p1356_p5 = pnand %p1355_p4, %p1349_p1 }
  0x6b   :  { %1359 = shalt.err (!%p1356_p5)
}
  0x6c   :  { %87 = dma.hbm_to_vmem [thread:$0]  %s1772_s8, 16, %s85_s16, [#allocation9]  }
  0x6d   :  { %s1360_s19 = scalar_lea.hbm %s1777_s13, 2048 }
  0x6e   :  { %p1361_p6 = scmp.ne.s32.totalorder %s1777_s13, %s1360_s19  ;;  %p1364_p7 = scmp.lt.u32.totalorder %s1360_s19, %s1777_s13 }
  0x70   :  { %p1366_p8 = pnand %p1364_p7, %p1361_p6 }
  0x72   :  { %1369 = shalt.err (!%p1366_p8)
}
  0x73   :  { %s1370_s25 = scalar_lea.vmem %s112_s26, 2048  ;;  %p1375_p10 = scmp.lt.s32.totalorder %s112_s26, %s112_s26 }
  0x74   :  { %p1371_p9 = scmp.ne.s32.totalorder %s112_s26, %s1370_s25  ;;  %p1376_p11 = scmp.lt.s32.totalorder %s1370_s25, %s1370_s25 }
  0x76   :  { %p1377_p12 = por %p1376_p11, %p1375_p10 }
  0x78   :  { %p1378_p13 = pnand %p1377_p12, %p1371_p9 }
  0x7a   :  { %1381 = shalt.err (!%p1378_p13)
}
  0x7b   :  { %s1447_s8 = smov 128   ;;  %s1448_s16 = smov 8  }
  0x7c   :  { %117 = dma.hbm_to_vmem [thread:$0]  %s1777_s13, 2048, %s112_s26, [#allocation12], %s1447_s8, %s1447_s8, %s1448_s16  }
  0x7d   :  { %1426 = dma.done.wait [#allocation3], 128  }
  0x7e   :  { %1427 = vsyncadd [#allocation3], 4294967168 }
  0x7f   :  { %1428 = dma.done.wait [#allocation6], 2064  }
  0x80   :  { %1429 = vsyncadd [#allocation6], 4294965232 }
  0x81   :  { %1430 = dma.done.wait [#allocation9], 32  }
  0x82   :  { %1431 = vsyncadd [#allocation9], 4294967264 }
  0x83   :  { %1432 = dma.done.wait [#allocation12], 3072  }
  0x84   :  { %1433 = vsyncadd [#allocation12], 4294964224  ;;  %v1449_v0 = vmov 0.0   ;;  %v1152_v1 = vld [vmem:[#allocation5 + $0x40] sm:$0xff]   ;;  %v1154_v3 = vld [vmem:[#allocation5 + $0x48] sm:$0xff]   ;;  %s1784_s0 = sld [smem:[#allocation23_spill]] }
  0x85   :  { %1068 = vmatprep.subr.bf16.mxu1 %v1449_v0  ;;  %v1153_v2 = vld [vmem:[#allocation5] sm:$0xff]   ;;  %1017 = vmatprep.subr.bf16.mxu0 %v1152_v1  ;;  %v1155_v4 = vld [vmem:[#allocation5 + $0x8] sm:$0xff]   ;;  %v1156_v5 = vld [vmem:[#allocation5 + $0x50] sm:$0xff]   ;;  %vm1450_vm0 = vmmov 0   ;;  %vm580_vm1 = vcmask 1043456   ;;  %vm568_vm2 = vcmask 64512  }
  0x86   :  { %1018 = vmatpush3.bf16.msra.mxu0 %v1153_v2  ;;  %v1157_v6 = vld [vmem:[#allocation5 + $0x10] sm:$0xff]   ;;  %v1158_v7 = vld [vmem:[#allocation5 + $0x58] sm:$0xff]   ;;  %v1160_v9 = vld [vmem:[#allocation5 + $0x60] sm:$0xff]   ;;  %1084 = vmatprep.mubr.msk.bf16.mxu1 %vm1450_vm0, %v1449_v0  ;;  %vm570_vm3 = vcmask 130048   ;;  %vm572_vm4 = vcmask 195584  }
  0x87   :  { %1019 = vmatprep.subr.bf16.mxu0 %v1154_v3  ;;  %v1159_v8 = vld [vmem:[#allocation5 + $0x18] sm:$0xff]   ;;  %v1161_v10 = vld [vmem:[#allocation5 + $0x20] sm:$0xff]   ;;  %v1162_v11 = vld [vmem:[#allocation5 + $0x68] sm:$0xff]  }
  0x88   :  { %v1170_v14 = vld [vmem:[%s1769_s5] sm:$0xff]   ;;  %v1163_v15 = vld [vmem:[#allocation5 + $0x28] sm:$0xff]   ;;  %v1164_v16 = vld [vmem:[#allocation5 + $0x70] sm:$0xff]  }
  0x89   :  { %1069 = vmatpush3.bf16.msra.mxu1 %v1170_v14  ;;  %v1171_v17 = vld [vmem:[%s1769_s5 + $0x8] sm:$0xff]   ;;  %v1165_v18 = vld [vmem:[#allocation5 + $0x30] sm:$0xff]   ;;  %v1166_v19 = vld [vmem:[#allocation5 + $0x78] sm:$0xff]  }
  0x8a   :  { %1020 = vmatpush3.bf16.msra.mxu0 %v1155_v4  ;;  %v144_v12 = vld [vmem:[%s1784_s0] sm:$0xff]  ;;  %1070 = vmatprep.subr.bf16.mxu1 %v1449_v0  ;;  %v1172_v20 = vld [vmem:[%s1769_s5 + $0x10] sm:$0xff]   ;;  %v1173_v22 = vld [vmem:[%s1769_s5 + $0x18] sm:$0xff]  }
  0x8b   :  { %1021 = vmatprep.subr.bf16.mxu0 %v1156_v5  ;;  %v950_v13 = vcombine.high %v144_v12, %v144_v12  ;;  %v1167_v21 = vld [vmem:[#allocation5 + $0x38] sm:$0xff]   ;;  %v949_v23 = vcombine.low %v144_v12, %v144_v12  ;;  %v1175_v25 = vld [vmem:[%s1769_s5 + $0x28] sm:$0xff]   ;;  %v1176_v26 = vld [vmem:[%s1769_s5 + $0x30] sm:$0xff]  }
  0x8c   :  { %v1174_v24 = vld [vmem:[%s1769_s5 + $0x20] sm:$0xff]   ;;  %v1177_v27 = vld [vmem:[%s1769_s5 + $0x38] sm:$0xff]   ;;  %v1179_v29 = vld [vmem:[%s1771_s7 + $0x8] sm:$0xff]  }
  0x8d   :  { %312 = vmatprep.mubr.bf16.mxu0 %v950_v13  ;;  %1071 = vmatpush3.bf16.msra.mxu1 %v1171_v17  ;;  %v1178_v28 = vld [vmem:[%s1771_s7] sm:$0xff]   ;;  %v1180_v30 = vld [vmem:[%s1771_s7 + $0x10] sm:$0xff]   ;;  %v1181_v31 = vld [vmem:[%s1771_s7 + $0x18] sm:$0xff]  }
  0x8e   :  { %1022 = vmatpush3.bf16.msra.mxu0 %v1157_v6  ;;  %1072 = vmatprep.subr.bf16.mxu1 %v1449_v0  ;;  %v1182_v32 = vld [vmem:[%s1771_s7 + $0x20] sm:$0xff]   ;;  %v1183_v33 = vld [vmem:[%s1771_s7 + $0x28] sm:$0xff]   ;;  %v1184_v45 = vld [vmem:[%s1771_s7 + $0x30] sm:$0xff]  }
  0x8f   :  { %1023 = vmatprep.subr.bf16.mxu0 %v1158_v7  ;;  %v142_v35 = vld [vmem:[%s1765_s1] sm:$0xff]  ;;  %v967_v39 = vld [vmem:[#allocation7] ss:$0 sm:$0xff]  ;;  %v1185_v46 = vld [vmem:[%s1771_s7 + $0x38] sm:$0xff]   ;;  %s1451_s7 = smov 120  }
  0x90   :  { %v968_v47 = vld [vmem:[#allocation8] ss:$0 sm:$0xff]  ;;  %v576_v55 = vld [vmem:[%s1773_s9] sm:$0xf]  ;;  %v977_v57 = vld [vmem:[#allocation10] ss:$0 sm:$0xff] }
  0x91   :  { %1073 = vmatpush3.bf16.msra.mxu1 %v1172_v20  ;;  %v582_v56 = vsel %vm580_vm1, %v576_v55, 0  ;;  %v557_v3 = vld [vmem:[#allocation2] sm:$0xff]  ;;  %v1186_v7 = vld [vmem:[#allocation11] sm:$0xff]   ;;  %s1452_s9 = smov 16   ;;  %v1191_v13 = vld [vmem:[#allocation11 + $0x28] sm:$0xff]  }
  0x92   :  { %1024 = vmatpush3.bf16.msra.mxu0 %v1159_v8  ;;  %1074 = vmatprep.subr.bf16.mxu1 %v1449_v0  ;;  %v1190_v12 = vld [vmem:[#allocation11 + $0x20] sm:$0xff]   ;;  %v1192_v14 = vld [vmem:[#allocation11 + $0x30] sm:$0xff]  }
  0x93   :  { %1025 = vmatprep.subr.bf16.mxu0 %v1160_v9  ;;  %v1187_v9 = vld [vmem:[#allocation11 + $0x8] sm:$0xff]  }
  0x94   :  { %v1196_v17 = vld [vmem:[#allocation13 + $0x4] ss:$8 sps:$4 sm:$0xff]  }
  0x95   :  { %1075 = vmatpush3.bf16.msra.mxu1 %v1173_v22  ;;  %v1202_v20 = vld [vmem:[#allocation13 + $0x24] ss:$8 sps:$4 sm:$0xff]   ;;  %v1205_v22 = vld [vmem:[#allocation13 + $0x34] ss:$8 sps:$4 sm:$0xff]  }
  0x96   :  { %1026 = vmatpush3.bf16.msra.mxu0 %v1161_v10  ;;  %1076 = vmatprep.subr.bf16.mxu1 %v1449_v0  ;;  %v1188_v10 = vld [vmem:[#allocation11 + $0x10] sm:$0xff]  }
  0x97   :  { %1027 = vmatprep.subr.bf16.mxu0 %v1162_v11  ;;  %v1189_v11 = vld [vmem:[#allocation11 + $0x18] sm:$0xff]  }
  0x99   :  { %1077 = vmatpush3.bf16.msra.mxu1 %v1174_v24  ;;  %v1208_v24 = vld [vmem:[#allocation13 + $0x44] ss:$8 sps:$4 sm:$0xff]  }
  0x9a   :  { %1028 = vmatpush3.bf16.msra.mxu0 %v1163_v15  ;;  %1078 = vmatprep.subr.bf16.mxu1 %v1449_v0  ;;  %v1193_v15 = vld [vmem:[#allocation11 + $0x38] sm:$0xff]  }
  0x9b   :  { %1029 = vmatprep.subr.bf16.mxu0 %v1164_v16  ;;  %v1194_v16 = vld [vmem:[#allocation13] ss:$8 sps:$4 sm:$0xff]  }
  0x9d   :  { %1079 = vmatpush3.bf16.msra.mxu1 %v1175_v25  ;;  %v1211_v25 = vld [vmem:[#allocation13 + $0x54] ss:$8 sps:$4 sm:$0xff]  }
  0x9e   :  { %1030 = vmatpush3.bf16.msra.mxu0 %v1165_v18  ;;  %1080 = vmatprep.subr.bf16.mxu1 %v1449_v0  ;;  %v1199_v18 = vld [vmem:[#allocation13 + $0x14] ss:$8 sps:$4 sm:$0xff]  }
  0x9f   :  { %1031 = vmatprep.subr.bf16.mxu0 %v1166_v19  ;;  %v1197_v19 = vld [vmem:[#allocation13 + $0x10] ss:$8 sps:$4 sm:$0xff]  }
  0xa1   :  { %1081 = vmatpush3.bf16.msra.mxu1 %v1176_v26  ;;  %v1209_v26 = vld [vmem:[#allocation13 + $0x50] ss:$8 sps:$4 sm:$0xff]  }
  0xa2   :  { %1032 = vmatpush3.bf16.msra.mxu0 %v1167_v21  ;;  %1082 = vmatprep.subr.bf16.mxu1 %v1449_v0  ;;  %v1200_v21 = vld [vmem:[#allocation13 + $0x20] ss:$8 sps:$4 sm:$0xff]  }
  0xa3   :  { %1088 = vmatprep.subr.bf16.mxu0 %v1449_v0 }
  0xa5   :  { %313 = vmatmul.mubr.bf16.vlgmr.msra.gmra.mrb[0].mxu0 %v949_v23  ;;  %1083 = vmatpush3.bf16.msra.mxu1 %v1177_v27  ;;  %v1203_v23 = vld [vmem:[#allocation13 + $0x30] ss:$8 sps:$4 sm:$0xff]  }
  0xa6   :  { %1104 = vmatprep.mubr.msk.bf16.mxu0 %vm1450_vm0, %v1449_v0  ;;  %1108 = vmatprep.subr.bf16.mxu1 %v1449_v0 }
  0xa7   :  { %1089 = vmatpush3.bf16.msra.mxu0 %v1178_v28 }
  0xa8   :  { %1090 = vmatprep.subr.bf16.mxu0 %v1449_v0 }
  0xab   :  { %1091 = vmatpush3.bf16.msra.mxu0 %v1179_v29  ;;  %v1214_v29 = vld [vmem:[#allocation13 + $0x64] ss:$8 sps:$4 sm:$0xff]  }
  0xac   :  { %1092 = vmatprep.subr.bf16.mxu0 %v1449_v0 }
  0xaf   :  { %1093 = vmatpush3.bf16.msra.mxu0 %v1180_v30 }
  0xb0   :  { %1094 = vmatprep.subr.bf16.mxu0 %v1449_v0 }
  0xb3   :  { %1095 = vmatpush3.bf16.msra.mxu0 %v1181_v31 }
  0xb4   :  { %1096 = vmatprep.subr.bf16.mxu0 %v1449_v0 }
  0xb7   :  { %1097 = vmatpush3.bf16.msra.mxu0 %v1182_v32  ;;  %v1212_v32 = vld [vmem:[#allocation13 + $0x60] ss:$8 sps:$4 sm:$0xff]  }
  0xb8   :  { %1098 = vmatprep.subr.bf16.mxu0 %v1449_v0 }
  0xbb   :  { %1099 = vmatpush3.bf16.msra.mxu0 %v1183_v33  ;;  %v143_v33 = vld [vmem:[%s1765_s1 + $0x8] sm:$0xff] }
  0xbc   :  { %1100 = vmatprep.subr.bf16.mxu0 %v1449_v0 }
  0xbf   :  { %1101 = vmatpush3.bf16.msra.mxu0 %v1184_v45  ;;  %v1453_v45 = vmov 0  }
  0xc0   :  { %1102 = vmatprep.subr.bf16.mxu0 %v1449_v0 }
  0xc3   :  { %1103 = vmatpush3.bf16.msra.mxu0 %v1185_v46  ;;  %v988_v46 = vld [vmem:[%s1776_s12] ss:$0 sm:$0xff] }
  0xc4   :  { %855 = vmatprep.subr.bf16.mxu0 %v1196_v17 }
 0x178   :  { %v1033_v34 = vpop.f32.mrb[0].mxu0 }
 0x179   :  { %v1034_v36 = vpop.f32.mrb[1].mxu0 }
 0x17a   :  { %v1035_v37 = vadd.f32 %v1034_v36, %v1033_v34  ;;  %v1036_v38 = vpop.f32.mrb[2].mxu0 }
 0x17b   :  { %v1037_v40 = vpop.f32.mrb[3].mxu0 }
 0x17c   :  { %v315_v41 = vadd.f32 %v1035_v37, %v142_v35  ;;  %v987_v35 = vld [vmem:[%s1774_s10] ss:$0 sm:$0xff]  ;;  %s1454_s10 = smov [#allocation14]  }
 0x17d   :  { %s923_s16 = sshll.u32 %s1454_s10, 4  ;;  %s924_s16 = int_to_ptr.vmem [resolvable:$true] %s923_s16 }
 0x17e   :  { %v327_v42 = vadd.f32 %v967_v39, %v315_v41  ;;  %s1382_s27 = scalar_lea.vmem %s924_s16, 128  ;;  %p1387_p1 = scmp.lt.s32.totalorder %s924_s16, %s924_s16 }
 0x17f   :  { %p1383_p0 = scmp.ne.s32.totalorder %s924_s16, %s1382_s27  ;;  %p1388_p2 = scmp.lt.s32.totalorder %s1382_s27, %s1382_s27 }
 0x180   :  { %v328_v43 = vmax.f32 %v327_v42, 0.0 }
 0x181   :  { %p1389_p3 = por %p1388_p2, %p1387_p1 }
 0x182   :  { %v329_v44 = vpack.c.bf16 %v328_v43, %v328_v43  ;;  %v1217_v43 = vld [vmem:[#allocation13 + $0x74] ss:$8 sps:$4 sm:$0xff]  }
 0x183   :  { %p1390_p4 = pnand %p1389_p3, %p1383_p0 }
 0x184   :  { %1085 = vmatmul.mubr.bf16.vlgmr.msra.gmra.mrb[0].mxu1 %v329_v44  ;;  %v1215_v44 = vld [vmem:[#allocation13 + $0x70] ss:$8 sps:$4 sm:$0xff]  }
 0x185   :  { %1110 = vmatprep.mubr.msk.bf16.mxu1 %vm1450_vm0, %v1449_v0  ;;  %1109 = vmatpush3.bf16.msra.mxu1 %v582_v56 }
 0x186   :  { %1114 = vmatprep.subr.bf16.mxu1 %v1449_v0 }
 0x257   :  { %v435_v48 = vpop.f32.mrb[0].mxu1 }
 0x258   :  { %v436_v49 = vadd.f32 %v968_v47, %v435_v48  ;;  %v1086_v50 = vpop.f32.mrb[1].mxu1 }
 0x259   :  { %v438_v51 = vpop.f32.mrb[2].mxu1 }
 0x25a   :  { %v441_v52 = vmax.f32 %v436_v49, 0.0  ;;  %v1087_v53 = vpop.f32.mrb[3].mxu1 }
 0x25c   :  { %v442_v54 = vpack.c.bf16 %v441_v52, %v441_v52 }
 0x25e   :  { %1105 = vmatmul.mubr.bf16.vlgmr.msra.gmra.mrb[4].mxu0 %v442_v54 }
 0x25f   :  { %856 = vmatpush1.bf16.msra.mxu0 %v1194_v16  ;;  %887 = vmatprep.mubr.bf16.mxu0 %v1453_v45 }
 0x260   :  { %857 = vmatprep.subr.bf16.mxu0 %v1199_v18 }
 0x263   :  { %858 = vmatpush1.bf16.msra.mxu0 %v1197_v19 }
 0x264   :  { %859 = vmatprep.subr.bf16.mxu0 %v1202_v20 }
 0x267   :  { %860 = vmatpush1.bf16.msra.mxu0 %v1200_v21 }
 0x268   :  { %861 = vmatprep.subr.bf16.mxu0 %v1205_v22 }
 0x26b   :  { %862 = vmatpush1.bf16.msra.mxu0 %v1203_v23 }
 0x26c   :  { %863 = vmatprep.subr.bf16.mxu0 %v1208_v24 }
 0x331   :  { %v548_v58 = vpop.f32.mrb[4].mxu0 }
 0x332   :  { %v1712_v59 = vadd.f32 %v977_v57, %v548_v58  ;;  %v1106_v60 = vpop.f32.mrb[5].mxu0 }
 0x333   :  { %v551_v61 = vpop.f32.mrb[6].mxu0 }
 0x334   :  { %v554_v62 = vmul.f32 0.5, %v1712_v59  ;;  %v1107_v63 = vpop.f32.mrb[7].mxu0 }
 0x336   :  { %v555_v1 = vmul.f32 1.442695, %v554_v62 }
 0x338   :  { %1218 = vpow2.f32 %v555_v1 }
 0x342   :  { %v1219_v2 = vpop.eup %1218 }
 0x343   :  { %559 = vrot.lane.b32.xlu0 %v1219_v2, %s1451_s7  ;;  %v569_v28 = vsel %vm568_vm2, %v1712_v59, %v1219_v2 }
 0x3b5   :  { %v560_v4 = vpop.permute.xlu0 %559 }
 0x3b6   :  { %v562_v5 = vmul.f32 %v560_v4, %v557_v3 }
 0x3b8   :  { %v563_v6 = vadd.f32 %v562_v5, %v1712_v59 }
 0x3ba   :  { %v575_v8 = vpack.c.bf16 %v563_v6, %v563_v6  ;;  %565 = vrot.lane.b32.xlu0 %v563_v6, %s1452_s9 }
 0x3bc   :  { %1111 = vmatmul.mubr.msk.bf16.vlgmr.msra.gmra.mrb[4].mxu1 %vm568_vm2, %v575_v8 }
 0x3bd   :  { %1115 = vmatpush3.bf16.msra.mxu1 %v1186_v7  ;;  %1130 = vmatprep.mubr.msk.bf16.mxu1 %vm1450_vm0, %v1449_v0 }
 0x3be   :  { %1116 = vmatprep.subr.bf16.mxu1 %v1449_v0 }
 0x3c1   :  { %1117 = vmatpush3.bf16.msra.mxu1 %v1187_v9 }
 0x3c2   :  { %1118 = vmatprep.subr.bf16.mxu1 %v1449_v0 }
 0x3c5   :  { %1119 = vmatpush3.bf16.msra.mxu1 %v1188_v10 }
 0x3c6   :  { %1120 = vmatprep.subr.bf16.mxu1 %v1449_v0 }
 0x3c9   :  { %1121 = vmatpush3.bf16.msra.mxu1 %v1189_v11 }
 0x3ca   :  { %1122 = vmatprep.subr.bf16.mxu1 %v1449_v0 }
 0x3cd   :  { %1123 = vmatpush3.bf16.msra.mxu1 %v1190_v12 }
 0x3ce   :  { %1124 = vmatprep.subr.bf16.mxu1 %v1449_v0 }
 0x3d1   :  { %1125 = vmatpush3.bf16.msra.mxu1 %v1191_v13 }
 0x3d2   :  { %1126 = vmatprep.subr.bf16.mxu1 %v1449_v0 }
 0x3d5   :  { %1127 = vmatpush3.bf16.msra.mxu1 %v1192_v14 }
 0x3d6   :  { %1128 = vmatprep.subr.bf16.mxu1 %v1449_v0  ;;  %v1206_v0 = vld [vmem:[#allocation13 + $0x40] ss:$8 sps:$4 sm:$0xff]  }
 0x3d7   :  { %864 = vmatpush1.bf16.msra.mxu0 %v1206_v0 }
 0x3d8   :  { %865 = vmatprep.subr.bf16.mxu0 %v1211_v25 }
 0x3d9   :  { %1129 = vmatpush3.bf16.msra.mxu1 %v1193_v15 }
 0x3db   :  { %866 = vmatpush1.bf16.msra.mxu0 %v1209_v26 }
 0x3dc   :  { %867 = vmatprep.subr.bf16.mxu0 %v1214_v29 }
 0x3df   :  { %868 = vmatpush1.bf16.msra.mxu0 %v1212_v32 }
 0x3e0   :  { %869 = vmatprep.subr.bf16.mxu0 %v1217_v43 }
 0x3e3   :  { %870 = vmatpush1.bf16.msra.mxu0 %v1215_v44 }
 0x42c   :  { %v566_v27 = vpop.permute.xlu0 %565 }
 0x42d   :  { %v571_v30 = vsel %vm570_vm3, %v569_v28, %v566_v27 }
 0x42e   :  { %v573_v31 = vsel %vm572_vm4, %v571_v30, 0.0 }
 0x42f   :  { %574 = vst [vmem:[#allocation14] sm:$0xff] %v573_v31 }
 0x48f   :  { %v618_v34 = vpop.f32.mrb[4].mxu1 }
 0x490   :  { %v619_v36 = vadd.f32 %v618_v34, %v143_v33  ;;  %v1112_v37 = vpop.f32.mrb[5].mxu1 }
 0x491   :  { %v621_v38 = vpop.f32.mrb[6].mxu1 }
 0x492   :  { %v631_v39 = vadd.f32 %v987_v35, %v619_v36  ;;  %v1113_v40 = vpop.f32.mrb[7].mxu1 }
 0x494   :  { %v632_v41 = vmax.f32 %v631_v39, 0.0 }
 0x496   :  { %v633_v42 = vpack.c.bf16 %v632_v41, %v632_v41 }
 0x498   :  { %1131 = vmatmul.mubr.bf16.vlgmr.msra.gmra.mrb[8].mxu1 %v633_v42 }
 0x56b   :  { %v739_v47 = vpop.f32.mrb[8].mxu1 }
 0x56c   :  { %v740_v48 = vadd.f32 %v988_v46, %v739_v47  ;;  %v1132_v49 = vpop.f32.mrb[9].mxu1 }
 0x56d   :  { %v742_v50 = vpop.f32.mrb[10].mxu1 }
 0x56e   :  { %v745_v51 = vmax.f32 %v740_v48, 0.0  ;;  %v1133_v52 = vpop.f32.mrb[11].mxu1 }
 0x570   :  { %v746_v53 = vpack.c.bf16 %v745_v51, %v745_v51 }
 0x572   :  { %888 = vmatmul.mubr.bf16.vlgmr.msra.gmra.mrb[8].mxu0 %v746_v53 }
 0x573   :  { %1393 = shalt.err (!%p1390_p4)
}
 0x574   :  { %s1394_s5 = scalar_lea.hbm %s1779_s15, 128 }
 0x575   :  { %p1395_p5 = scmp.ne.s32.totalorder %s1779_s15, %s1394_s5  ;;  %p1398_p6 = scmp.lt.u32.totalorder %s1394_s5, %s1779_s15 }
 0x577   :  { %p1400_p7 = pnand %p1398_p6, %p1395_p5 }
 0x579   :  { %1403 = shalt.err (!%p1400_p7)
}
 0x57a   :  { %926 = dma.vmem_to_hbm [thread:$0]  %s924_s16, 128, %s1779_s15, [#allocation4]   ;;  %v765_v54 = vlaneseq  ;;  %v763_v57 = vld [vmem:[%s1778_s14] sm:$0x3] }
 0x57b   :  { %s1455_s14 = smov [#allocation15]  }
 0x57c   :  { %v766_v55 = vshrl.u32 %v765_v54, 7  ;;  %s933_s15 = sshll.u32 %s1455_s14, 4  ;;  %s934_s15 = int_to_ptr.vmem [resolvable:$true] %s933_s15 }
 0x57d   :  { %s1404_s18 = scalar_lea.vmem %s934_s15, 128  ;;  %p1409_p9 = scmp.lt.s32.totalorder %s934_s15, %s934_s15 }
 0x57e   :  { %v767_v56 = vsub.s32 0, %v766_v55  ;;  %v771_v58 = vsub.s32 1, %v766_v55  ;;  %p1405_p8 = scmp.ne.s32.totalorder %s934_s15, %s1404_s18  ;;  %p1410_p10 = scmp.lt.s32.totalorder %s1404_s18, %s1404_s18 }
 0x580   :  { %v768_v59 = vrot.slane %v763_v57, %v767_v56  ;;  %v772_v60 = vrot.slane %v763_v57, %v771_v58  ;;  %p1411_p11 = por %p1410_p10, %p1409_p9 }
 0x582   :  { %p1412_p12 = pnand %p1411_p11, %p1405_p8 }
 0x645   :  { %v889_v61 = vpop.f32.mrb[8].mxu0 }
 0x646   :  { %v890_v62 = vadd.f32 %v889_v61, %v768_v59  ;;  %v891_v63 = vpop.f32.mrb[9].mxu0 }
 0x647   :  { %v892_v1 = vadd.f32 %v891_v63, %v772_v60  ;;  %v893_v2 = vpop.f32.mrb[10].mxu0 }
 0x648   :  { %v1013_v3 = vmul.f32 -1.442695, %v890_v62  ;;  %v894_v4 = vpop.f32.mrb[11].mxu0 }
 0x649   :  { %v1014_v5 = vmul.f32 -1.442695, %v892_v1 }
 0x64a   :  { %1220 = vpow2.f32 %v1013_v3 }
 0x64b   :  { %1222 = vpow2.f32 %v1014_v5 }
 0x654   :  { %v1221_v6 = vpop.eup %1220 }
 0x655   :  { %v1223_v7 = vpop.eup %1222  ;;  %v902_v8 = vadd.f32 1.0, %v1221_v6 }
 0x656   :  { %v903_v9 = vadd.f32 1.0, %v1223_v7 }
 0x657   :  { %1224 = vrcp.f32 %v902_v8 }
 0x658   :  { %1226 = vrcp.f32 %v903_v9 }
 0x661   :  { %v1225_v10 = vpop.eup %1224 }
 0x662   :  { %v1227_v11 = vpop.eup %1226 }
 0x663   :  { %v1016_v12 = vpack.c.bf16 %v1227_v11, %v1225_v10 }
 0x665   :  { %916 = vst [vmem:[#allocation15] sm:$0xff] %v1016_v12 }
 0x666   :  { %1415 = shalt.err (!%p1412_p12)
}
 0x667   :  { %s1785_s30 = sld [smem:[#allocation24_spill]] }
 0x66d   :  { %s1416_s22 = scalar_lea.hbm %s1785_s30, 128 }
 0x66e   :  { %p1417_p13 = scmp.ne.s32.totalorder %s1785_s30, %s1416_s22  ;;  %p1420_p0 = scmp.lt.u32.totalorder %s1416_s22, %s1785_s30 }
 0x670   :  { %p1422_p1 = pnand %p1420_p0, %p1417_p13 }
 0x672   :  { %1425 = shalt.err (!%p1422_p1)
}
 0x673   :  { %936 = dma.vmem_to_hbm [thread:$0]  %s934_s15, 128, %s1785_s30, [#allocation16]  }
 0x674   :  { %1434 = dma.done.wait [#allocation4], 128  }
 0x675   :  { %1435 = vsyncadd [#allocation4], 4294967168 }
 0x676   :  { %1436 = dma.done.wait [#allocation16], 128  }
 0x677   :  { %1437 = vsyncadd [#allocation16], 4294967168 }
 0x678   :  { %943 = vsyncpa [#allocation3], 1 }
 0x679   :  { %944 = vsyncpa [#allocation6], 1 }
 0x67a   :  { %945 = vsyncpa [#allocation9], 1 }
 0x67b   :  { %946 = vsyncpa [#allocation12], 1 }
 0x67c   :  { %947 = vsyncpa [#allocation4], 1 }
 0x67d   :  { %948 = vsyncpa [#allocation16], 1 }

</bundles_post_ra>
